<compile_context>
chip_gen: v7x
topology: tpu7x:2x2x1
jax: 0.10.0
libtpu: 0.0.40
codegen_flags: <defaults>
</compile_context>

<pallas_src>
import math

import jax
import jax.numpy as jnp
from jax.experimental import pallas as pl
from jax.experimental.pallas import tpu as pltpu

_LANE = 128
_SUBLANE = 8


def _drop_path_kernel(scale_ref, x_ref, o_ref):
    """One (tile_b, tile_l) slab times its per-row scale.

    scale_ref : (tile_b, 1) in x.dtype — 0 or 1/keep_prob per sample.
    x_ref     : (tile_b, tile_l) VMEM input tile.
    o_ref     : (tile_b, tile_l) VMEM output tile.
    """
    o_ref[...] = (x_ref[...] * scale_ref[...]).astype(o_ref.dtype)


def _vmem_budget():
    """Return (target bytes per tile buffer, scoped vmem_limit_bytes)."""
    try:
        cap = int(pltpu.get_tpu_info().vmem_capacity_bytes)
    except Exception:
        # Safe defaults if the query is unavailable.
        return 4 * 1024 * 1024, 32 * 1024 * 1024
    if cap <= 64 * 1024 * 1024:
        # v7x-class: 64 MiB VMEM per TensorCore, 3.2 TB/s HBM.
        return 4 * 1024 * 1024, 28 * 1024 * 1024
    # v5e / v6e: 128 MiB VMEM.
    return 8 * 1024 * 1024, 48 * 1024 * 1024


def _choose_tiles(B, L, itemsize, target_bytes):
    """Pick (tile_b, tile_l) respecting the (8, 128) block rules."""
    max_lane_elems = max(_LANE, target_bytes // itemsize)
    if L <= max_lane_elems:
        tile_l = L                                     # full row: always legal
    else:
        tile_l = max(_LANE, (max_lane_elems // _LANE) * _LANE)  # mult of 128

    want_b = max(1, target_bytes // (tile_l * itemsize))
    if want_b >= B or B <= _SUBLANE:
        tile_b = B                                     # full batch dim: legal
    else:
        tile_b = max(_SUBLANE, (want_b // _SUBLANE) * _SUBLANE)  # mult of 8
    return tile_b, tile_l


def drop_path_pallas(x, drop_prob: float = 0.0, training: bool = False,
                     key=None, *, target_tile_bytes=None):
    """Pallas equivalent of drop_path(x, drop_prob, training)."""
    if drop_prob == 0.0 or not training:
        return x
    if key is None:
        raise ValueError(
            "drop_path_pallas requires an explicit PRNG key in training mode")

    keep_prob = 1.0 - drop_prob
    orig_shape = x.shape
    B = orig_shape[0]
    L = math.prod(orig_shape[1:])

    # Per-sample decision + rescale, matching floor(keep_prob + U[0,1)) / kp.
    # Cast once to x.dtype so the in-kernel multiply stays in native width.
    rand = jax.random.uniform(key, (B,), dtype=jnp.float32)
    scale = (jnp.floor(keep_prob + rand) / keep_prob).astype(x.dtype).reshape(B, 1)

    itemsize = jnp.dtype(x.dtype).itemsize
    auto_tile_bytes, vmem_limit = _vmem_budget()
    if target_tile_bytes is None:
        target_tile_bytes = auto_tile_bytes
    tile_b, tile_l = _choose_tiles(B, L, itemsize, target_tile_bytes)

    # Contiguous (B, L) view — no pad, no copy, no trailing slice.
    x2 = x.reshape(B, L)

    grid_b = pl.cdiv(B, tile_b)
    grid_l = pl.cdiv(L, tile_l)

    # Larger axis first so megacore sharding (v7x: 2 TCs) has work on it.
    if grid_l >= grid_b:
        grid = (grid_l, grid_b)
        x_map = lambda j, i: (i, j)
        s_map = lambda j, i: (i, 0)
    else:
        grid = (grid_b, grid_l)
        x_map = lambda i, j: (i, j)
        s_map = lambda i, j: (i, 0)

    out = pl.pallas_call(
        _drop_path_kernel,
        out_shape=jax.ShapeDtypeStruct((B, L), x.dtype),
        grid_spec=pltpu.PrefetchScalarGridSpec(
            num_scalar_prefetch=0,
            grid=grid,
            in_specs=[
                pl.BlockSpec((tile_b, 1), s_map),         # per-sample scale
                pl.BlockSpec((tile_b, tile_l), x_map),    # activation slab
            ],
            out_specs=pl.BlockSpec((tile_b, tile_l), x_map),
        ),
        compiler_params=pltpu.CompilerParams(
            dimension_semantics=("parallel", "parallel"),
            vmem_limit_bytes=vmem_limit,
        ),
        cost_estimate=pl.CostEstimate(
            flops=B * L,
            transcendentals=0,
            bytes_accessed=2 * B * L * itemsize + B * scale.dtype.itemsize,
        ),
    )(scale, x2)

    return out.reshape(orig_shape)


def _drop_path_ref(x, rand, drop_prob):
    """Pure-JAX reference with the same per-sample randoms (for checking)."""
    keep_prob = 1.0 - drop_prob
    mask = jnp.floor(keep_prob + rand).reshape((-1,) + (1,) * (x.ndim - 1))
    return (x / keep_prob * mask).astype(x.dtype)


if __name__ == "__main__":
    drop_prob = 0.25
    key = jax.random.PRNGKey(0)
    kx, kmask, kx2 = jax.random.split(key, 3)

    # Small token-stream shape consistent with the transformer module.
    B, N, D = 2, 8, 32
    x = jax.random.normal(kx, (B, N, D), dtype=jnp.float32)

    # Eval mode (training=False): identity.
    out_eval = drop_path_pallas(x, drop_prob=drop_prob, training=False, key=kmask)
    out_eval = jax.block_until_ready(out_eval)
    assert jnp.array_equal(out_eval, x), "eval mode must be identity"

    # Training mode: per-sample stochastic depth, checked against pure JAX.
    out_train = drop_path_pallas(x, drop_prob=drop_prob, training=True, key=kmask)
    out_train = jax.block_until_ready(out_train)
    rand = jax.random.uniform(kmask, (B,), dtype=jnp.float32)
    ref = _drop_path_ref(x, rand, drop_prob)
    assert out_train.shape == x.shape and out_train.dtype == x.dtype
    assert jnp.allclose(out_train, ref, atol=1e-6, rtol=1e-6)

    # Exercise the masked ragged-edge path (both grid axes non-divisible) by
    # forcing tiny tiles; L = 9*150 = 1350 is not a multiple of 128 and B = 10
    # is not a multiple of the 8-row batch tile.
    B2, N2, D2 = 10, 9, 150
    x_big = jax.random.normal(kx2, (B2, N2, D2), dtype=jnp.float32)
    out_big = drop_path_pallas(x_big, drop_prob=drop_prob, training=True,
                               key=kmask, target_tile_bytes=4096)
    out_big = jax.block_until_ready(out_big)
    rand2 = jax.random.uniform(kmask, (B2,), dtype=jnp.float32)
    ref2 = _drop_path_ref(x_big, rand2, drop_prob)
    assert out_big.shape == x_big.shape and out_big.dtype == x_big.dtype
    assert jnp.allclose(out_big, ref2, atol=1e-6, rtol=1e-6)

    print("KERNEL_OK")
</pallas_src>

<mosaic_0001>
module attributes {stable_mosaic.version = 11 : i64} {
  func.func @_drop_path_kernel(%arg0: i32, %arg1: i32, %arg2: memref<2x1xf32, #tpu.memory_space<vmem>>, %arg3: memref<2x256xf32, #tpu.memory_space<vmem>>, %arg4: memref<2x256xf32, #tpu.memory_space<vmem>>) attributes {dimension_semantics = [#tpu.dimension_semantics<parallel>, #tpu.dimension_semantics<parallel>], iteration_bounds = array<i64: 1, 1>, scalar_prefetch = 0 : i64, scratch_operands = 0 : i64, tpu.core_type = #tpu.core_type<tc>, window_params = [{transform_indices = @transform_0, window_bounds = array<i64: 2, 1>}, {transform_indices = @transform_1, window_bounds = array<i64: 2, 256>}, {transform_indices = @transform_2, window_bounds = array<i64: 2, 256>}]} {
    %c0 = arith.constant 0 : index
    %c0_0 = arith.constant 0 : index
    %0 = vector.load %arg3[%c0, %c0_0] : memref<2x256xf32, #tpu.memory_space<vmem>>, vector<2x256xf32>
    %c0_1 = arith.constant 0 : index
    %c0_2 = arith.constant 0 : index
    %1 = vector.load %arg2[%c0_1, %c0_2] : memref<2x1xf32, #tpu.memory_space<vmem>>, vector<2x1xf32>
    %2 = vector.broadcast %1 : vector<2x1xf32> to vector<2x256xf32>
    %3 = arith.mulf %0, %2 : vector<2x256xf32>
    %c0_3 = arith.constant 0 : index
    %c0_4 = arith.constant 0 : index
    %4 = vector.load %arg4[%c0_3, %c0_4] : memref<2x256xf32, #tpu.memory_space<vmem>>, vector<2x256xf32>
    tpu.vector_store %arg4[%c0_3, %c0_4], %3 {strides = array<i32>} : memref<2x256xf32, #tpu.memory_space<vmem>>, vector<2x256xf32>,
    return
  }
  func.func @transform_0(%arg0: i32, %arg1: i32) -> (i32, i32) {
    %c0_i32 = arith.constant 0 : i32
    %c0_i32_0 = arith.constant 0 : i32
    return %arg1, %c0_i32 : i32, i32
  }
  func.func @transform_1(%arg0: i32, %arg1: i32) -> (i32, i32) {
    %c0_i32 = arith.constant 0 : i32
    return %arg1, %arg0 : i32, i32
  }
  func.func @transform_2(%arg0: i32, %arg1: i32) -> (i32, i32) {
    %c0_i32 = arith.constant 0 : i32
    return %arg1, %arg0 : i32, i32
  }
}

</mosaic_0001>

<bundles_post_ra>
// kernel: tpu_custom_call.1
= control target key start
LH: loop header
LB: loop body
LE: loop exit
PB: predicated region body
PF: predicated region fallthrough
CT: control target
= control target key end

     0   :  { %v70_v1 = vmov 0   ;;  %s106_s0 = inlined_call_operand.vmem [shape: f32[2,1], index: 0, kind: input, shape index: {}]   ;;  %s107_s1 = inlined_call_operand.vmem [shape: f32[2,256], index: 1, kind: input, shape index: {}]   ;;  %s108_s2 = inlined_call_operand.hbm [shape: f32[2,256], index: 2, kind: output, shape index: {}]  }
   0x1   :  { %v13_v0 = vld [vmem:[%s106_s0] sm:$0x3]  ;;  %45 = vset.pattern.permute.xlu0 %v70_v1 }
   0x2   :  { %7 = vsyncpa [#allocation3], 0  ;;  %16 = vperm.xlu0 %45, %v13_v0   ;;  %v71_v2 = vmov 269488144   ;;  %v21_v4 = vlaneseq  ;;  %v12_v9 = vld [vmem:[%s107_s1] sm:$0xf] }
   0x3   :  { %v19_v3 = vunpack.c.l.s4 %v71_v2  ;;  %s72_s13 = smov [#allocation2]  }
   0x4   :  { %v22_v6 = vshrl.u32 %v21_v4, 7  ;;  %s34_s14 = sshll.u32 %s72_s13, 4  ;;  %s35_s14 = int_to_ptr.vmem [resolvable:$true] %s34_s14 }
   0x5   :  { %v20_v5 = vunpack.c.0.s8 %v19_v3  ;;  %s46_s0 = scalar_lea.vmem %s35_s14, 64  ;;  %p51_p1 = scmp.lt.s32.totalorder %s35_s14, %s35_s14 }
   0x6   :  { %p47_p0 = scmp.ne.s32.totalorder %s35_s14, %s46_s0  ;;  %p52_p2 = scmp.lt.s32.totalorder %s46_s0, %s46_s0 }
   0x7   :  { %v23_v7 = vsub.s32 %v20_v5, %v22_v6 }
   0x8   :  { %p53_p3 = por %p52_p2, %p51_p1 }
   0xa   :  { %p54_p4 = pnand %p53_p3, %p47_p0 }
  0x81   :  { %v17_v8 = vpop.permute.xlu0 %16 }
  0x82   :  { %v24_v10 = vrot.slane %v17_v8, %v23_v7 }
  0x84   :  { %v26_v11 = vmul.f32 %v24_v10, %v12_v9 }
  0x86   :  { %27 = vst [vmem:[#allocation2] sm:$0xf] %v26_v11 }
  0x87   :  { %57 = shalt.err (!%p54_p4)
}
  0x88   :  { %s58_s17 = scalar_lea.hbm %s108_s2, 64 }
  0x89   :  { %p59_p5 = scmp.ne.s32.totalorder %s108_s2, %s58_s17  ;;  %p62_p6 = scmp.lt.u32.totalorder %s58_s17, %s108_s2 }
  0x8b   :  { %p64_p7 = pnand %p62_p6, %p59_p5 }
  0x8d   :  { %67 = shalt.err (!%p64_p7)
}
  0x8e   :  { %37 = dma.vmem_to_hbm [thread:$0]  %s35_s14, 64, %s108_s2, [#allocation3]  }
  0x8f   :  { %68 = dma.done.wait [#allocation3], 64  }
  0x90   :  { %69 = vsyncadd [#allocation3], 4294967232 }
  0x91   :  { %41 = vsyncpa [#allocation3], 1 }

</bundles_post_ra>
